<compile_context>
chip_gen: v6e
topology: v6e:2x2x1
jax: 0.10.0
libtpu: 0.0.40
codegen_flags: <defaults>
</compile_context>

<pallas_src>
import functools

import jax
import jax.numpy as jnp
from jax import lax
from jax.experimental import pallas as pl
from jax.experimental.pallas import tpu as pltpu

EPS = 1e-12
POWER_ITERATIONS = 1


# --------------------- kernel 1: power iteration -> inv_sigma -----------------
def _power_iter_kernel(w_ref, u_ref, u_out_ref, v_out_ref, inv_sigma_ref):
    # TODO(synk): for very large Cout x (Cin*KH*KW) weights this single-block
    # kernel would exceed the scoped VMEM limit (esp. v7x's 64 MiB); tile K
    # with a grid axis, accumulate partial dot/norm terms in scratch, and pass
    # W as bf16 (f32 accumulate) to halve the weight DMA.
    w = w_ref[...]                      # (Cout, K) f32
    u = u_ref[...]                      # (1, Cout) f32

    v = jnp.zeros((1, w.shape[1]), jnp.float32)
    wv = jnp.zeros((1, w.shape[0]), jnp.float32)
    for _ in range(POWER_ITERATIONS):
        # v = l2normalize(W^T u), computed row-major as (1, K) -- no transpose.
        vt = jnp.dot(u, w, preferred_element_type=jnp.float32)
        v = vt / (jnp.sqrt(jnp.sum(vt * vt)) + EPS)
        # wv = (W v) as a row (1, Cout): contract on W's 2nd axis directly
        # (avoids materializing w.T -> no full-matrix XLU transpose).
        wv = lax.dot_general(v, w, (((1,), (1,)), ((), ())),
                             preferred_element_type=jnp.float32)
        u = wv / (jnp.sqrt(jnp.sum(wv * wv)) + EPS)

    sigma = jnp.sum(u * wv)             # u . (W v)   (matches module's sigma)
    u_out_ref[...] = u
    v_out_ref[...] = v
    inv_sigma_ref[...] = (1.0 / sigma)[None, None]


def power_iteration(w_mat, u_row):
    Cout, K = w_mat.shape
    return pl.pallas_call(
        _power_iter_kernel,
        out_shape=(
            jax.ShapeDtypeStruct((1, Cout), jnp.float32),   # updated u buffer
            jax.ShapeDtypeStruct((1, K), jnp.float32),      # updated v buffer
            jax.ShapeDtypeStruct((1, 1), jnp.float32),      # 1 / sigma
        ),
    )(w_mat, u_row)


# --------------- kernel 2: banded-matmul conv + 1/sigma + bias ----------------
def _fused_conv_kernel(inv_sigma_ref, x_ref, w_ref, b_ref, o_ref, *, H, NB):
    # inv_sigma_ref: (1, 1) f32 in SMEM
    # x_ref:  (NB, H+2, (W+2)*Cin) bf16   padded, lane-packed activation slabs
    # w_ref:  (KH, (W+2)*Cin, W*Cout) bf16 banded (Toeplitz) tap weights
    # b_ref:  (1, W*Cout) f32             bias tiled over the j (lane) blocks
    # o_ref:  (NB, H, W*Cout)  f32        lane-dense (j, co)-interleaved output
    KH = w_ref.shape[0]
    inv_sigma = inv_sigma_ref[0, 0]
    bias = b_ref[...]                                      # (1, W*Cout) f32

    for b in range(NB):                                    # static tiny unroll
        # di is a pure static sublane slice of the slab; dj/ci accumulation is
        # done *inside* the MXU via the banded RHS (K = (W+2)*Cin).
        acc = jnp.dot(x_ref[b, 0:H, :], w_ref[0],
                      preferred_element_type=jnp.float32)  # (H, W*Cout) f32
        for di in range(1, KH):
            acc = acc + jnp.dot(x_ref[b, di:di + H, :], w_ref[di],
                                preferred_element_type=jnp.float32)
        # tiny f32 epilogue (acc tile is only H x W*Cout): fold 1/sigma + bias
        o_ref[b, :, :] = acc * inv_sigma + bias


def _pick_batch_block(N, bytes_per_elem, vmem_budget=4 << 20):
    """Images per grid step: amortize ~0.35us step overhead for large N while
    keeping >=2 grid steps (megacore / v7x dual-TC) and bounded VMEM."""
    best = 1
    for d in range(1, N + 1):
        if N % d:
            continue
        if d * bytes_per_elem > vmem_budget:
            break
        if N >= 2 and (N // d) < 2:
            continue
        best = d
    return best


def fused_conv(inv_sigma, xp, w_band, bias_row, *, H):
    # TODO(synk): add a second ("parallel") row-tile grid axis with a +2 halo
    # so a single large image (N=1) still occupies both v7x TensorCores.
    N, Hp, L = xp.shape
    KH, _, Mo = w_band.shape

    NB = _pick_batch_block(N, Hp * L * 2 + H * Mo * 4)
    grid = (pl.cdiv(N, NB),)

    # explicit VMEM budget (double-buffered slab + output, resident weights)
    vmem_need = 2 * (NB * Hp * L * 2 + NB * H * Mo * 4) + KH * L * Mo * 2 \
        + Mo * 4 + (1 << 20)
    vmem_limit = int(min(64 << 20, max(16 << 20, 2 * vmem_need)))

    kernel = functools.partial(_fused_conv_kernel, H=H, NB=NB)
    return pl.pallas_call(
        kernel,
        out_shape=jax.ShapeDtypeStruct((N, H, Mo), jnp.float32),
        grid=grid,
        in_specs=[
            pl.BlockSpec(memory_space=pltpu.MemorySpace.SMEM),       # 1/sigma
            pl.BlockSpec((NB, Hp, L), lambda n: (n, 0, 0)),          # x slabs
            pl.BlockSpec((KH, L, Mo), lambda n: (0, 0, 0)),          # weights
            pl.BlockSpec((1, Mo), lambda n: (0, 0)),                 # bias
        ],
        out_specs=pl.BlockSpec((NB, H, Mo), lambda n: (n, 0, 0)),
        compiler_params=pltpu.CompilerParams(
            dimension_semantics=("parallel",),
            vmem_limit_bytes=vmem_limit),
    )(inv_sigma, xp, w_band, bias_row)


# ----------------------------- wrapper (glue) ---------------------------------
def spectral_norm_conv_forward(x, w_bar, bias, u):
    """SpectralNorm(Conv2d(Cin, Cout, 3, stride=1, pad=1)).forward(x).

    x: (N, Cin, H, W) NCHW ; w_bar: (Cout, Cin, KH, KW) OIHW ; u: (Cout,)
    Returns (y, u_new, v_new): y in NCHW; u_new/v_new are the updated
    power-iteration buffers the caller should persist (PyTorch semantics).
    """
    Cout, Cin, KH, KW = w_bar.shape
    N, _, H, W = x.shape

    # --- _update_u_v (Pallas kernel 1): sigma + buffer updates ---
    w_mat = w_bar.reshape(Cout, Cin * KH * KW).astype(jnp.float32)
    u_new, v_new, inv_sigma = power_iteration(
        w_mat, u.reshape(1, Cout).astype(jnp.float32))

    # --- banded (Toeplitz) tap-weight prep: (KH, (W+2)*Cin, W*Cout) ---
    # R[di, (j+dj)*Cin + ci, j*Cout + co] = w_bar[co, ci, di, dj]
    L = (W + 2) * Cin                       # lane width of one padded row
    Mo = W * Cout                           # lane width of one output row
    w_flat = w_bar.transpose(2, 3, 1, 0).reshape(KH, KW * Cin, Cout)
    w_flat = w_flat.astype(jnp.float32)
    rows = jnp.arange(L)[None, :]                       # (1, L)
    jcol = jnp.arange(W)[:, None]                       # (W, 1)
    rel = rows - jcol * Cin                             # (W, L)
    valid = (rel >= 0) & (rel < KW * Cin)
    rel_c = jnp.clip(rel, 0, KW * Cin - 1)
    band = jnp.where(valid[None, :, :, None], w_flat[:, rel_c, :], 0.0)
    w_band = band.transpose(0, 2, 1, 3).reshape(KH, L, Mo).astype(jnp.bfloat16)
    # NOTE: Mo = W*Cout = 128 here -> fully lane-dense output, zero padding.
    # For Cout > 128 on v6e/v7x, tile Mo in multiples of 256 to fill the MXU.

    bias_row = jnp.tile(bias.astype(jnp.float32), W).reshape(1, Mo)

    # --- single layout pass on the activation: NCHW -> lane-packed padded rows
    xp = x.transpose(0, 2, 3, 1)                                  # (N,H,W,Cin)
    xp = jnp.pad(xp, ((0, 0), (1, 1), (1, 1), (0, 0)))
    xp = xp.reshape(N, H + 2, L).astype(jnp.bfloat16)             # (N,H+2,L)

    # --- fused conv (banded matmuls) + 1/sigma + bias (Pallas kernel 2) ---
    y_flat = fused_conv(inv_sigma, xp, w_band, bias_row, H=H)     # (N,H,W*Cout)

    # last-dim split is free; NCHW transpose is the PyTorch API boundary.
    y = y_flat.reshape(N, H, W, Cout).transpose(0, 3, 1, 2)
    return y, u_new.reshape(Cout), v_new.reshape(Cin * KH * KW)


# ----------------------------- pure-JAX reference -----------------------------
def _ref_forward(x, w_bar, bias, u):
    Hh = w_bar.shape[0]
    w_mat = w_bar.reshape(Hh, -1)
    v = w_mat.T @ u
    v = v / (jnp.linalg.norm(v) + EPS)
    u_new = w_mat @ v
    u_new = u_new / (jnp.linalg.norm(u_new) + EPS)
    sigma = u_new @ (w_mat @ v)
    w_n = w_bar / sigma
    y = jax.lax.conv_general_dilated(x, w_n, (1, 1), ((1, 1), (1, 1)))
    return y + bias[None, :, None, None], u_new


if __name__ == "__main__":
    key = jax.random.PRNGKey(0)
    k1, k2, k3, k4 = jax.random.split(key, 4)

    # wrapped module: Conv2d(in=4, out=8, kernel=3, stride=1, padding=1)
    N, Cin, Hs, Ws = 2, 4, 16, 16
    Cout, KH, KW = 8, 3, 3

    x = jax.random.normal(k1, (N, Cin, Hs, Ws), jnp.float32)
    w_bar = jax.random.normal(k2, (Cout, Cin, KH, KW), jnp.float32) * 0.1
    bias = jax.random.normal(k3, (Cout,), jnp.float32) * 0.1
    u0 = jax.random.normal(k4, (Cout,), jnp.float32)
    u0 = u0 / (jnp.linalg.norm(u0) + EPS)
    # note: the module's `v` buffer is overwritten before first use with
    # power_iterations=1, so its init does not affect the forward pass.

    fwd = jax.jit(spectral_norm_conv_forward)
    y, u_new, v_new = fwd(x, w_bar, bias, u0)
    y = jax.block_until_ready(y)

    y_ref, u_ref = _ref_forward(x, w_bar, bias, u0)
    assert y.shape == (N, Cout, Hs, Ws)
    # bf16 matmul operands -> relaxed tolerance (f32 accumulation/epilogue).
    assert jnp.allclose(y, y_ref, atol=2e-2, rtol=2e-2), float(
        jnp.max(jnp.abs(y - y_ref)))
    # updated power-iteration buffer (f32 end-to-end) should be near-exact.
    assert jnp.allclose(u_new, u_ref, atol=1e-4, rtol=1e-4), float(
        jnp.max(jnp.abs(u_new - u_ref)))
    print("KERNEL_OK")
</pallas_src>

<mosaic_0001>
module attributes {stable_mosaic.version = 11 : i64} {
  func.func @_power_iter_kernel(%arg0: memref<8x36xf32, #tpu.memory_space<vmem>>, %arg1: memref<1x8xf32, #tpu.memory_space<vmem>>, %arg2: memref<1x8xf32, #tpu.memory_space<vmem>>, %arg3: memref<1x36xf32, #tpu.memory_space<vmem>>, %arg4: memref<1x1xf32, #tpu.memory_space<vmem>>) attributes {dimension_semantics = [], scalar_prefetch = 0 : i64, scratch_operands = 0 : i64, tpu.core_type = #tpu.core_type<tc>} {
    %c0 = arith.constant 0 : index
    %c0_0 = arith.constant 0 : index
    %0 = vector.load %arg0[%c0, %c0_0] : memref<8x36xf32, #tpu.memory_space<vmem>>, vector<8x36xf32>
    %c0_1 = arith.constant 0 : index
    %c0_2 = arith.constant 0 : index
    %1 = vector.load %arg1[%c0_1, %c0_2] : memref<1x8xf32, #tpu.memory_space<vmem>>, vector<1x8xf32>
    %cst = arith.constant dense<0.000000e+00> : vector<1x36xf32>
    %2 = tpu.matmul %1, %0, %cst {dimension_numbers = #tpu.dot_dimension_numbers<[1], [0], [0], [1], [0, 0, 1, 1], [], []>} : vector<1x8xf32>, vector<8x36xf32>, vector<1x36xf32> -> vector<1x36xf32>
    %3 = arith.mulf %2, %2 : vector<1x36xf32>
    %4 = vector.shape_cast %3 : vector<1x36xf32> to vector<1x1x36xf32>
    %cst_3 = arith.constant dense<0.000000e+00> : vector<1xf32>
    %5 = vector.multi_reduction <add>, %4, %cst_3 [1, 2] : vector<1x1x36xf32> to vector<1xf32>
    %6 = vector.shape_cast %5 : vector<1xf32> to vector<1x1x1xf32>
    %7 = vector.extract %6[0, 0, 0] : f32 from vector<1x1x1xf32>
    %8 = math.sqrt %7 : f32
    %cst_4 = arith.constant 9.99999996E-13 : f32
    %9 = arith.addf %8, %cst_4 : f32
    %10 = vector.broadcast %9 : f32 to vector<1x36xf32>
    %11 = arith.divf %2, %10 : vector<1x36xf32>
    %cst_5 = arith.constant dense<0.000000e+00> : vector<1x8xf32>
    %12 = tpu.matmul %11, %0, %cst_5 {dimension_numbers = #tpu.dot_dimension_numbers<[1], [1], [0], [0], [0, 0, 1, 0], [], []>} : vector<1x36xf32>, vector<8x36xf32>, vector<1x8xf32> -> vector<1x8xf32>
    %13 = arith.mulf %12, %12 : vector<1x8xf32>
    %14 = vector.shape_cast %13 : vector<1x8xf32> to vector<1x1x8xf32>
    %cst_6 = arith.constant dense<0.000000e+00> : vector<1xf32>
    %15 = vector.multi_reduction <add>, %14, %cst_6 [1, 2] : vector<1x1x8xf32> to vector<1xf32>
    %16 = vector.shape_cast %15 : vector<1xf32> to vector<1x1x1xf32>
    %17 = vector.extract %16[0, 0, 0] : f32 from vector<1x1x1xf32>
    %18 = math.sqrt %17 : f32
    %cst_7 = arith.constant 9.99999996E-13 : f32
    %19 = arith.addf %18, %cst_7 : f32
    %20 = vector.broadcast %19 : f32 to vector<1x8xf32>
    %21 = arith.divf %12, %20 : vector<1x8xf32>
    %22 = arith.mulf %21, %12 : vector<1x8xf32>
    %23 = vector.shape_cast %22 : vector<1x8xf32> to vector<1x1x8xf32>
    %cst_8 = arith.constant dense<0.000000e+00> : vector<1xf32>
    %24 = vector.multi_reduction <add>, %23, %cst_8 [1, 2] : vector<1x1x8xf32> to vector<1xf32>
    %25 = vector.shape_cast %24 : vector<1xf32> to vector<1x1x1xf32>
    %26 = vector.extract %25[0, 0, 0] : f32 from vector<1x1x1xf32>
    %c0_9 = arith.constant 0 : index
    %c0_10 = arith.constant 0 : index
    %27 = vector.load %arg2[%c0_9, %c0_10] : memref<1x8xf32, #tpu.memory_space<vmem>>, vector<1x8xf32>
    tpu.vector_store %arg2[%c0_9, %c0_10], %21 {strides = array<i32>} : memref<1x8xf32, #tpu.memory_space<vmem>>, vector<1x8xf32>,
    %c0_11 = arith.constant 0 : index
    %c0_12 = arith.constant 0 : index
    %28 = vector.load %arg3[%c0_11, %c0_12] : memref<1x36xf32, #tpu.memory_space<vmem>>, vector<1x36xf32>
    tpu.vector_store %arg3[%c0_11, %c0_12], %11 {strides = array<i32>} : memref<1x36xf32, #tpu.memory_space<vmem>>, vector<1x36xf32>,
    %cst_13 = arith.constant 1.000000e+00 : f32
    %29 = arith.divf %cst_13, %26 : f32
    %30 = vector.broadcast %29 : f32 to vector<1x1xf32>
    %c0_14 = arith.constant 0 : index
    %c0_15 = arith.constant 0 : index
    %31 = vector.load %arg4[%c0_14, %c0_15] : memref<1x1xf32, #tpu.memory_space<vmem>>, vector<1x1xf32>
    tpu.vector_store %arg4[%c0_14, %c0_15], %30 {strides = array<i32>} : memref<1x1xf32, #tpu.memory_space<vmem>>, vector<1x1xf32>,
    return
  }
}

module attributes {stable_mosaic.version = 11 : i64} {
  func.func @_fused_conv_kernel(%arg0: i32, %arg1: memref<1x1xf32, #tpu.memory_space<smem>>, %arg2: memref<1x18x72xbf16, #tpu.memory_space<vmem>>, %arg3: memref<3x72x128xbf16, #tpu.memory_space<vmem>>, %arg4: memref<1x128xf32, #tpu.memory_space<vmem>>, %arg5: memref<1x16x128xf32, #tpu.memory_space<vmem>>) attributes {dimension_semantics = [#tpu.dimension_semantics<parallel>], iteration_bounds = array<i64: 2>, scalar_prefetch = 0 : i64, scratch_operands = 0 : i64, tpu.core_type = #tpu.core_type<tc>, window_params = [{transform_indices = @transform_0, window_bounds = array<i64: 1, 1>}, {transform_indices = @transform_1, window_bounds = array<i64: 1, 18, 72>}, {pipeline_mode = #tpu.pipeline_mode<synchronous>, transform_indices = @transform_2, window_bounds = array<i64: 3, 72, 128>}, {pipeline_mode = #tpu.pipeline_mode<synchronous>, transform_indices = @transform_3, window_bounds = array<i64: 1, 128>}, {transform_indices = @transform_4, window_bounds = array<i64: 1, 16, 128>}]} {
    %c0 = arith.constant 0 : index
    %c0_0 = arith.constant 0 : index
    %0 = memref.load %arg1[%c0, %c0_0] : memref<1x1xf32, #tpu.memory_space<smem>>
    %c0_1 = arith.constant 0 : index
    %c0_2 = arith.constant 0 : index
    %1 = vector.load %arg4[%c0_1, %c0_2] : memref<1x128xf32, #tpu.memory_space<vmem>>, vector<1x128xf32>
    %c0_3 = arith.constant 0 : index
    %c0_4 = arith.constant 0 : index
    %c0_5 = arith.constant 0 : index
    %2 = vector.load %arg2[%c0_3, %c0_4, %c0_5] : memref<1x18x72xbf16, #tpu.memory_space<vmem>>, vector<1x16x72xbf16>
    %3 = vector.shape_cast %2 : vector<1x16x72xbf16> to vector<16x72xbf16>
    %c0_6 = arith.constant 0 : index
    %c0_7 = arith.constant 0 : index
    %c0_8 = arith.constant 0 : index
    %4 = vector.load %arg3[%c0_6, %c0_7, %c0_8] : memref<3x72x128xbf16, #tpu.memory_space<vmem>>, vector<1x72x128xbf16>
    %5 = vector.shape_cast %4 : vector<1x72x128xbf16> to vector<72x128xbf16>
    %cst = arith.constant dense<0.000000e+00> : vector<16x128xf32>
    %6 = tpu.matmul %3, %5, %cst {dimension_numbers = #tpu.dot_dimension_numbers<[1], [0], [0], [1], [0, 0, 1, 1], [], []>} : vector<16x72xbf16>, vector<72x128xbf16>, vector<16x128xf32> -> vector<16x128xf32>
    %c0_9 = arith.constant 0 : index
    %c1 = arith.constant 1 : index
    %c0_10 = arith.constant 0 : index
    %7 = vector.load %arg2[%c0_9, %c1, %c0_10] : memref<1x18x72xbf16, #tpu.memory_space<vmem>>, vector<1x16x72xbf16>
    %8 = vector.shape_cast %7 : vector<1x16x72xbf16> to vector<16x72xbf16>
    %c1_11 = arith.constant 1 : index
    %c0_12 = arith.constant 0 : index
    %c0_13 = arith.constant 0 : index
    %9 = vector.load %arg3[%c1_11, %c0_12, %c0_13] : memref<3x72x128xbf16, #tpu.memory_space<vmem>>, vector<1x72x128xbf16>
    %10 = vector.shape_cast %9 : vector<1x72x128xbf16> to vector<72x128xbf16>
    %cst_14 = arith.constant dense<0.000000e+00> : vector<16x128xf32>
    %11 = tpu.matmul %8, %10, %cst_14 {dimension_numbers = #tpu.dot_dimension_numbers<[1], [0], [0], [1], [0, 0, 1, 1], [], []>} : vector<16x72xbf16>, vector<72x128xbf16>, vector<16x128xf32> -> vector<16x128xf32>
    %12 = arith.addf %6, %11 : vector<16x128xf32>
    %c0_15 = arith.constant 0 : index
    %c2 = arith.constant 2 : index
    %c0_16 = arith.constant 0 : index
    %13 = vector.load %arg2[%c0_15, %c2, %c0_16] : memref<1x18x72xbf16, #tpu.memory_space<vmem>>, vector<1x16x72xbf16>
    %14 = vector.shape_cast %13 : vector<1x16x72xbf16> to vector<16x72xbf16>
    %c2_17 = arith.constant 2 : index
    %c0_18 = arith.constant 0 : index
    %c0_19 = arith.constant 0 : index
    %15 = vector.load %arg3[%c2_17, %c0_18, %c0_19] : memref<3x72x128xbf16, #tpu.memory_space<vmem>>, vector<1x72x128xbf16>
    %16 = vector.shape_cast %15 : vector<1x72x128xbf16> to vector<72x128xbf16>
    %cst_20 = arith.constant dense<0.000000e+00> : vector<16x128xf32>
    %17 = tpu.matmul %14, %16, %cst_20 {dimension_numbers = #tpu.dot_dimension_numbers<[1], [0], [0], [1], [0, 0, 1, 1], [], []>} : vector<16x72xbf16>, vector<72x128xbf16>, vector<16x128xf32> -> vector<16x128xf32>
    %18 = arith.addf %12, %17 : vector<16x128xf32>
    %19 = vector.broadcast %0 : f32 to vector<16x128xf32>
    %20 = arith.mulf %18, %19 : vector<16x128xf32>
    %21 = vector.broadcast %1 : vector<1x128xf32> to vector<16x128xf32>
    %22 = arith.addf %20, %21 : vector<16x128xf32>
    %c0_21 = arith.constant 0 : index
    %c0_22 = arith.constant 0 : index
    %c0_23 = arith.constant 0 : index
    %23 = vector.load %arg5[%c0_21, %c0_22, %c0_23] : memref<1x16x128xf32, #tpu.memory_space<vmem>>, vector<1x16x128xf32>
    %24 = vector.shape_cast %23 : vector<1x16x128xf32> to vector<16x128xf32>
    %25 = vector.shape_cast %22 : vector<16x128xf32> to vector<1x16x128xf32>
    tpu.vector_store %arg5[%c0_21, %c0_22, %c0_23], %25 {strides = array<i32>} : memref<1x16x128xf32, #tpu.memory_space<vmem>>, vector<1x16x128xf32>,
    return
  }
  func.func @transform_0(%arg0: i32) -> (i32, i32) {
    %c0_i32 = arith.constant 0 : i32
    %c0_i32_0 = arith.constant 0 : i32
    %c0_i32_1 = arith.constant 0 : i32
    return %c0_i32, %c0_i32_0 : i32, i32
  }
  func.func @transform_1(%arg0: i32) -> (i32, i32, i32) {
    %c0_i32 = arith.constant 0 : i32
    %c0_i32_0 = arith.constant 0 : i32
    %c0_i32_1 = arith.constant 0 : i32
    return %arg0, %c0_i32, %c0_i32_0 : i32, i32, i32
  }
  func.func @transform_2(%arg0: i32) -> (i32, i32, i32) {
    %c0_i32 = arith.constant 0 : i32
    %c0_i32_0 = arith.constant 0 : i32
    %c0_i32_1 = arith.constant 0 : i32
    %c0_i32_2 = arith.constant 0 : i32
    return %c0_i32, %c0_i32_0, %c0_i32_1 : i32, i32, i32
  }
  func.func @transform_3(%arg0: i32) -> (i32, i32) {
    %c0_i32 = arith.constant 0 : i32
    %c0_i32_0 = arith.constant 0 : i32
    %c0_i32_1 = arith.constant 0 : i32
    return %c0_i32, %c0_i32_0 : i32, i32
  }
  func.func @transform_4(%arg0: i32) -> (i32, i32, i32) {
    %c0_i32 = arith.constant 0 : i32
    %c0_i32_0 = arith.constant 0 : i32
    %c0_i32_1 = arith.constant 0 : i32
    return %arg0, %c0_i32, %c0_i32_0 : i32, i32, i32
  }
}

</mosaic_0001>

<bundles_post_ra>
// kernel: tile.8
= control target key start
LH: loop header
LB: loop body
LE: loop exit
PB: predicated region body
PF: predicated region fallthrough
CT: control target
= control target key end

     0   :  { %s28_s0 = inlined_call_operand.vmem [shape: f32[8], index: 0, kind: input, shape index: {}]   ;;  %s29_s1 = inlined_call_operand.vmem [shape: f32[16,8], index: 1, kind: output, shape index: {}]  }
   0x1   :  { %v4_v0 = vld [vmem:[%s28_s0] ss:$0 sm:$0xff] }
   0x2   :  { %5 = vst [vmem:[%s29_s1] sm:$0xff] %v4_v0  ;;  %8 = vst [vmem:[%s29_s1 + $0x8] sm:$0xff] %v4_v0 }

// kernel: tile.9
= control target key start
LH: loop header
LB: loop body
LE: loop exit
PB: predicated region body
PF: predicated region fallthrough
CT: control target
= control target key end

     0   :  { %s133_s10 = smov 120   ;;  %s134_s11 = smov 104   ;;  %vm3_vm0 = vcmask 64512   ;;  %vm9_vm1 = vcmask 1048512   ;;  %vm15_vm2 = vcmask 982912   ;;  %vm21_vm3 = vcmask 917312   ;;  %s209_s0 = inlined_call_operand.vmem [shape: f32[16,8], index: 0, kind: input, shape index: {}]   ;;  %s210_s1 = inlined_call_operand.vmem [shape: f32[1,128], index: 1, kind: output, shape index: {}]  }
   0x1   :  { %v103_v0 = vld [vmem:[%s209_s0 + $0xf] sm:$0x1]   ;;  %v105_v1 = vld [vmem:[%s209_s0 + $0xd] sm:$0x1]   ;;  %v104_v2 = vld [vmem:[%s209_s0 + $0xe] sm:$0x1]  }
   0x2   :  { %7 = vrot.lane.b32.xlu0 %v103_v0, %s133_s10  ;;  %19 = vrot.lane.b32.xlu1 %v105_v1, %s134_s11  ;;  %v106_v3 = vld [vmem:[%s209_s0 + $0xc] sm:$0x1]   ;;  %s135_s16 = smov 112   ;;  %s136_s17 = smov 96   ;;  %v107_v4 = vld [vmem:[%s209_s0 + $0xb] sm:$0x1]  }
   0x3   :  { %v108_v5 = vld [vmem:[%s209_s0 + $0xa] sm:$0x1]   ;;  %v2_v6 = vld [vmem:[%s209_s0] sm:$0x1]   ;;  %s137_s24 = smov 88   ;;  %s138_s25 = smov 80  }
   0x4   :  { %4 = vst.msk [vmem:[#allocation0] sm:$0x1] %vm3_vm0, %v2_v6   ;;  %v109_v7 = vld [vmem:[%s209_s0 + $0x9] sm:$0x1]   ;;  %v110_v8 = vld [vmem:[%s209_s0 + $0x8] sm:$0x1]  }
   0x5   :  { %s139_s30 = smov 72   ;;  %s140_s2 = smov 64   ;;  %v111_v9 = vld [vmem:[%s209_s0 + $0x7] sm:$0x1]   ;;  %v112_v10 = vld [vmem:[%s209_s0 + $0x6] sm:$0x1]  }
   0x6   :  { %13 = vrot.lane.b32.xlu0 %v104_v2, %s135_s16  ;;  %25 = vrot.lane.b32.xlu1 %v106_v3, %s136_s17  ;;  %s141_s7 = smov 56   ;;  %s142_s8 = smov 48   ;;  %v113_v11 = vld [vmem:[%s209_s0 + $0x5] sm:$0x1]   ;;  %v114_v12 = vld [vmem:[%s209_s0 + $0x4] sm:$0x1]  }
   0x7   :  { %s143_s13 = smov 40   ;;  %s144_s14 = smov 32   ;;  %v115_v13 = vld [vmem:[%s209_s0 + $0x3] sm:$0x1]   ;;  %v116_v14 = vld [vmem:[%s209_s0 + $0x2] sm:$0x1]  }
   0x8   :  { %s145_s19 = smov 24   ;;  %s146_s20 = smov 16   ;;  %v117_v15 = vld [vmem:[%s209_s0 + $0x1] sm:$0x1]   ;;  %vm27_vm4 = vcmask 851712   ;;  %vm33_vm5 = vcmask 786112  }
   0x9   :  { %s147_s0 = smov 8   ;;  %vm39_vm6 = vcmask 720512   ;;  %vm45_vm7 = vcmask 654912   ;;  %vm51_vm8 = vcmask 589312   ;;  %vm57_vm9 = vcmask 523712  }
   0xa   :  { %31 = vrot.lane.b32.xlu0 %v107_v4, %s137_s24  ;;  %37 = vrot.lane.b32.xlu1 %v108_v5, %s138_s25  ;;  %vm63_vm10 = vcmask 458112   ;;  %vm69_vm11 = vcmask 392512   ;;  %vm75_vm12 = vcmask 326912   ;;  %vm81_vm13 = vcmask 261312  }
   0xb   :  { %vm87_vm14 = vcmask 195712   ;;  %vm93_vm15 = vcmask 130112  }
   0xe   :  { %43 = vrot.lane.b32.xlu0 %v109_v7, %s139_s30  ;;  %49 = vrot.lane.b32.xlu1 %v110_v8, %s140_s2 }
  0x12   :  { %55 = vrot.lane.b32.xlu0 %v111_v9, %s141_s7  ;;  %61 = vrot.lane.b32.xlu1 %v112_v10, %s142_s8 }
  0x16   :  { %67 = vrot.lane.b32.xlu0 %v113_v11, %s143_s13  ;;  %73 = vrot.lane.b32.xlu1 %v114_v12, %s144_s14 }
  0x1a   :  { %79 = vrot.lane.b32.xlu0 %v115_v13, %s145_s19  ;;  %85 = vrot.lane.b32.xlu1 %v116_v14, %s146_s20 }
  0x1e   :  { %91 = vrot.lane.b32.xlu0 %v117_v15, %s147_s0 }
  0x74   :  { %v8_v16 = vpop.permute.xlu0 %7   ;;  %v20_v17 = vpop.permute.xlu1 %19  }
  0x75   :  { %10 = vst.msk [vmem:[#allocation0] sm:$0x1] %vm9_vm1, %v8_v16  }
  0x78   :  { %v14_v18 = vpop.permute.xlu0 %13   ;;  %v26_v19 = vpop.permute.xlu1 %25  }
  0x79   :  { %16 = vst.msk [vmem:[#allocation0] sm:$0x1] %vm15_vm2, %v14_v18  }
  0x7a   :  { %22 = vst.msk [vmem:[#allocation0] sm:$0x1] %vm21_vm3, %v20_v17  }
  0x7b   :  { %28 = vst.msk [vmem:[#allocation0] sm:$0x1] %vm27_vm4, %v26_v19  }
  0x7c   :  { %v32_v20 = vpop.permute.xlu0 %31   ;;  %v38_v21 = vpop.permute.xlu1 %37  }
  0x7d   :  { %34 = vst.msk [vmem:[#allocation0] sm:$0x1] %vm33_vm5, %v32_v20  }
  0x7e   :  { %40 = vst.msk [vmem:[#allocation0] sm:$0x1] %vm39_vm6, %v38_v21  }
  0x80   :  { %v44_v22 = vpop.permute.xlu0 %43   ;;  %v50_v23 = vpop.permute.xlu1 %49  }
  0x81   :  { %46 = vst.msk [vmem:[#allocation0] sm:$0x1] %vm45_vm7, %v44_v22  }
  0x82   :  { %52 = vst.msk [vmem:[#allocation0] sm:$0x1] %vm51_vm8, %v50_v23  }
  0x84   :  { %v56_v24 = vpop.permute.xlu0 %55   ;;  %v62_v25 = vpop.permute.xlu1 %61  }
  0x85   :  { %58 = vst.msk [vmem:[#allocation0] sm:$0x1] %vm57_vm9, %v56_v24  }
  0x86   :  { %64 = vst.msk [vmem:[#allocation0] sm:$0x1] %vm63_vm10, %v62_v25  }
  0x88   :  { %v68_v26 = vpop.permute.xlu0 %67   ;;  %v74_v27 = vpop.permute.xlu1 %73  }
  0x89   :  { %70 = vst.msk [vmem:[#allocation0] sm:$0x1] %vm69_vm11, %v68_v26  }
  0x8a   :  { %76 = vst.msk [vmem:[#allocation0] sm:$0x1] %vm75_vm12, %v74_v27  }
  0x8c   :  { %v80_v28 = vpop.permute.xlu0 %79   ;;  %v86_v29 = vpop.permute.xlu1 %85  }
  0x8d   :  { %82 = vst.msk [vmem:[#allocation0] sm:$0x1] %vm81_vm13, %v80_v28  }
  0x8e   :  { %88 = vst.msk [vmem:[#allocation0] sm:$0x1] %vm87_vm14, %v86_v29  }
  0x90   :  { %v92_v30 = vpop.permute.xlu0 %91  }
  0x91   :  { %94 = vst.msk [vmem:[#allocation0] sm:$0x1] %vm93_vm15, %v92_v30  }
  0x98   :  { %v99_v31 = vld [vmem:[#allocation0] sm:$0x1] }
  0x99   :  { %102 = vst [vmem:[%s210_s1] sm:$0x1] %v99_v31 }

// kernel: spectral_norm_conv_forward.2
= control target key start
LH: loop header
LB: loop body
LE: loop exit
PB: predicated region body
PF: predicated region fallthrough
CT: control target
= control target key end

     0   :  { %10 = vsyncpa [#allocation3], 0  ;;  %vm18_vm0 = vcmask 64512   ;;  %v387_v2 = vmov 0.0   ;;  %vm388_vm1 = vmmov 0   ;;  %s439_s0 = inlined_call_operand.vmem [shape: f32[8,36], index: 0, kind: input, shape index: {}]   ;;  %s440_s1 = inlined_call_operand.vmem [shape: f32[1,8], index: 1, kind: input, shape index: {}]   ;;  %s441_s2 = inlined_call_operand.hbm [shape: f32[1,8], index: 2, kind: output, shape index: {0}]   ;;  %s442_s3 = inlined_call_operand.hbm [shape: f32[1,36], index: 3, kind: output, shape index: {1}]   ;;  %s443_s4 = inlined_call_operand.hbm [shape: f32[1,1], index: 4, kind: output, shape index: {2}]  }
   0x1   :  { %v16_v0 = vld [vmem:[%s439_s0] sm:$0xff]  ;;  %286 = vmatprep.subr.mxu0 %v387_v2  ;;  %288 = vmatprep.mubr.msk.f32.mxu0 %vm388_vm1, %v387_v2 }
   0x2   :  { %v17_v1 = vld [vmem:[%s440_s1] sm:$0x1] }
   0x3   :  { %11 = vsyncpa [#allocation5], 0  ;;  %287 = vmatpush3.msra.mxu0 %v16_v0  ;;  %291 = vmatprep.subr.mxu1 %v387_v2  ;;  %vm93_vm2 = vcmask 286720   ;;  %vm117_vm3 = vcmask 293888   ;;  %vm195_vm6 = vcmask 57344   ;;  %s389_s23 = smov [#allocation4]  }
   0x4   :  { %289 = vmatmul.mubr.msk.f32.vlgmr.msra.gmra.mxu0 %vm18_vm0, %v17_v1  ;;  %293 = vmatprep.mubr.msk.f32.mxu1 %vm388_vm1, %v387_v2  ;;  %s254_s24 = sshll.u32 %s389_s23, 4  ;;  %s390_s25 = smov [#allocation2]   ;;  %s255_s24 = int_to_ptr.vmem [resolvable:$true] %s254_s24 }
   0x5   :  { %292 = vmatpush3.xpose.msk.msra.mxu1 %vm117_vm3, %v16_v0  ;;  %s244_s26 = sshll.u32 %s390_s25, 4  ;;  %s323_s27 = scalar_lea.vmem %s255_s24, 16  ;;  %s245_s26 = int_to_ptr.vmem [resolvable:$true] %s244_s26 }
   0x6   :  { %p324_p0 = scmp.ne.s32.totalorder %s255_s24, %s323_s27  ;;  %s327_s28 = scalar_lea.vmem %s255_s24, 32 }
   0x7   :  { %p328_p1 = scmp.lt.s32.totalorder %s255_s24, %s255_s24  ;;  %p329_p2 = scmp.lt.s32.totalorder %s327_s28, %s323_s27 }
   0x9   :  { %p330_p3 = por %p329_p2, %p328_p1 }
   0xb   :  { %p331_p4 = pnand %p330_p3, %p324_p0 }
  0xc4   :  { %v88_v3 = vpop.f32.mrf.mxu0 }
  0xc5   :  { %v92_v4 = vmul.f32 %v88_v3, %v88_v3 }
  0xc6   :  { %v290_v5 = vpop.f32.mrf.mxu0 }
  0xc7   :  { %v94_v6 = vsel %vm93_vm2, %v92_v4, 0.0 }
  0xc8   :  { %95 = vadd.xlane.f32.xlu0 %v94_v6 }
 0x151   :  { %v96_v7 = vpop.xlane.xlu0 %95 }
 0x152   :  { %v97_v8 = vrot.slane %v96_v7, 4 }
 0x154   :  { %v98_v9 = vadd.f32 %v97_v8, %v96_v7 }
 0x156   :  { %v99_v10 = vrot.slane %v98_v9, 2 }
 0x158   :  { %v100_v11 = vadd.f32 %v99_v10, %v98_v9 }
 0x15a   :  { %v101_v12 = vrot.slane %v100_v11, 1 }
 0x15c   :  { %v102_v13 = vadd.f32 %v101_v12, %v100_v11 }
 0x15e   :  { %296 = vpush %v102_v13 }
 0x18f   :  { %s297_s0 = spop %296 }
 0x190   :  { %v104_v14 = vstv %s297_s0 }
 0x191   :  { %313 = vrsqrt.f32 %v104_v14  ;;  %vm107_vm4 = vcmp.eq.f32.partialorder %v104_v14, inf  ;;  %v110_v17 = vand.u32 2147483648, %v104_v14  ;;  %vm109_vm5 = vcmp.eq.f32.partialorder %v104_v14, 0.0 }
 0x19e   :  { %v314_v15 = vpop.eup %313 }
 0x19f   :  { %v106_v16 = vmul.f32 %v314_v15, %v104_v14 }
 0x1a1   :  { %v108_v18 = vsel %vm107_vm4, %v104_v14, %v106_v16 }
 0x1a2   :  { %v111_v19 = vsel %vm109_vm5, %v110_v17, %v108_v18 }
 0x1a3   :  { %298 = vpush %v111_v19 }
 0x1d4   :  { %s299_s1 = spop %298 }
 0x1d5   :  { %s113_s19 = sadd.f32 1e-12, %s299_s1 }
 0x1d7   :  { %v114_v20 = vstv %s113_s19 }
 0x1d8   :  { %315 = vrcp.f32 %v114_v20 }
 0x1e5   :  { %v316_v21 = vpop.eup %315 }
 0x1e6   :  { %v116_v22 = vmul.f32 %v316_v21, %v88_v3 }
 0x1e8   :  { %294 = vmatmul.mubr.msk.f32.vlgmr.msra.gmra.mxu1 %vm117_vm3, %v116_v22  ;;  %231 = vst.msk [vmem:[#allocation4] sm:$0x1] %vm93_vm2, %v116_v22 }
 0x2a8   :  { %v190_v23 = vpop.f32.mrf.mxu1 }
 0x2a9   :  { %v194_v24 = vmul.f32 %v190_v23, %v190_v23 }
 0x2aa   :  { %v295_v25 = vpop.f32.mrf.mxu1 }
 0x2ab   :  { %v196_v26 = vsel %vm195_vm6, %v194_v24, 0.0 }
 0x2ac   :  { %197 = vadd.xlane.f32.xlu0 %v196_v26 }
 0x335   :  { %v198_v27 = vpop.xlane.xlu0 %197 }
 0x336   :  { %v199_v28 = vrot.slane %v198_v27, 4 }
 0x338   :  { %v200_v29 = vadd.f32 %v199_v28, %v198_v27 }
 0x33a   :  { %v201_v30 = vrot.slane %v200_v29, 2 }
 0x33c   :  { %v202_v31 = vadd.f32 %v201_v30, %v200_v29 }
 0x33e   :  { %v203_v32 = vrot.slane %v202_v31, 1 }
 0x340   :  { %v204_v33 = vadd.f32 %v203_v32, %v202_v31 }
 0x342   :  { %300 = vpush %v204_v33 }
 0x373   :  { %s301_s20 = spop %300 }
 0x374   :  { %v206_v34 = vstv %s301_s20 }
 0x375   :  { %317 = vrsqrt.f32 %v206_v34  ;;  %vm209_vm7 = vcmp.eq.f32.partialorder %v206_v34, inf  ;;  %v212_v37 = vand.u32 2147483648, %v206_v34  ;;  %vm211_vm8 = vcmp.eq.f32.partialorder %v206_v34, 0.0 }
 0x382   :  { %v318_v35 = vpop.eup %317 }
 0x383   :  { %v208_v36 = vmul.f32 %v318_v35, %v206_v34 }
 0x385   :  { %v210_v38 = vsel %vm209_vm7, %v206_v34, %v208_v36 }
 0x386   :  { %v213_v39 = vsel %vm211_vm8, %v212_v37, %v210_v38 }
 0x387   :  { %302 = vpush %v213_v39 }
 0x3b8   :  { %s303_s21 = spop %302 }
 0x3b9   :  { %s215_s22 = sadd.f32 1e-12, %s303_s21 }
 0x3bb   :  { %v216_v40 = vstv %s215_s22 }
 0x3bc   :  { %319 = vrcp.f32 %v216_v40 }
 0x3c9   :  { %v320_v41 = vpop.eup %319 }
 0x3ca   :  { %v218_v42 = vmul.f32 %v320_v41, %v190_v23 }
 0x3cc   :  { %v219_v43 = vmul.f32 %v218_v42, %v190_v23  ;;  %230 = vst.msk [vmem:[#allocation2] sm:$0x1] %vm195_vm6, %v218_v42 }
 0x3ce   :  { %v220_v44 = vsel %vm195_vm6, %v219_v43, 0.0 }
 0x3cf   :  { %221 = vadd.xlane.f32.xlu1 %v220_v44 }
 0x458   :  { %v222_v45 = vpop.xlane.xlu1 %221 }
 0x459   :  { %v223_v46 = vrot.slane %v222_v45, 4 }
 0x45a   :  { %334 = shalt.err (!%p331_p4)
}
 0x45b   :  { %257 = dma.vmem_to_hbm [thread:$0]  %s255_s24, 16, %s442_s3, [#allocation5]   ;;  %v224_v47 = vadd.f32 %v223_v46, %v222_v45 }
 0x45c   :  { %s343_s5 = scalar_lea.vmem %s245_s26, 16  ;;  %s347_s6 = scalar_lea.vmem %s245_s26, 32 }
 0x45d   :  { %p344_p5 = scmp.ne.s32.totalorder %s245_s26, %s343_s5  ;;  %p348_p6 = scmp.lt.s32.totalorder %s245_s26, %s245_s26 }
 0x45e   :  { %p349_p7 = scmp.lt.s32.totalorder %s347_s6, %s343_s5 }
 0x460   :  { %p350_p8 = por %p349_p7, %p348_p6 }
 0x462   :  { %p351_p9 = pnand %p350_p8, %p344_p5 }
 0x464   :  { %354 = shalt.err (!%p351_p9)
}
 0x465   :  { %247 = dma.vmem_to_hbm [thread:$0]  %s245_s26, 16, %s441_s2, [#allocation3]   ;;  %v225_v48 = vrot.slane %v224_v47, 2  ;;  %vm236_vm9 = vcmask 0  }
 0x466   :  { %s391_s9 = smov [#allocation6]  }
 0x467   :  { %v226_v49 = vadd.f32 %v225_v48, %v224_v47  ;;  %s264_s10 = sshll.u32 %s391_s9, 4  ;;  %s265_s10 = int_to_ptr.vmem [resolvable:$true] %s264_s10 }
 0x468   :  { %s363_s12 = scalar_lea.vmem %s265_s10, 16  ;;  %s367_s2 = scalar_lea.vmem %s265_s10, 32 }
 0x469   :  { %v227_v50 = vrot.slane %v226_v49, 1  ;;  %p364_p10 = scmp.ne.s32.totalorder %s265_s10, %s363_s12  ;;  %p368_p11 = scmp.lt.s32.totalorder %s265_s10, %s265_s10 }
 0x46a   :  { %p369_p12 = scmp.lt.s32.totalorder %s367_s2, %s363_s12 }
 0x46b   :  { %v228_v51 = vadd.f32 %v227_v50, %v226_v49 }
 0x46c   :  { %p370_p13 = por %p369_p12, %p368_p11 }
 0x46d   :  { %304 = vpush %v228_v51 }
 0x46e   :  { %p371_p0 = pnand %p370_p13, %p364_p10 }
 0x49e   :  { %s305_s3 = spop %304 }
 0x49f   :  { %v232_v52 = vstv %s305_s3 }
 0x4a0   :  { %321 = vrcp.f32 %v232_v52 }
 0x4ad   :  { %v322_v53 = vpop.eup %321 }
 0x4ae   :  { %306 = vpush %v322_v53 }
 0x4df   :  { %s307_s11 = spop %306 }
 0x4e0   :  { %v235_v54 = vstv %s307_s11 }
 0x4e1   :  { %237 = vst.msk [vmem:[#allocation6] sm:$0x1] %vm236_vm9, %v235_v54 }
 0x4e2   :  { %374 = shalt.err (!%p371_p0)
}
 0x4e3   :  { %267 = dma.vmem_to_hbm [thread:$0]  %s265_s10, 16, %s443_s4, [#allocation5]  }
 0x4e4   :  { %383 = dma.done.wait [#allocation3], 16  }
 0x4e5   :  { %384 = vsyncadd [#allocation3], 4294967280 }
 0x4e6   :  { %385 = dma.done.wait [#allocation5], 32  }
 0x4e7   :  { %386 = vsyncadd [#allocation5], 4294967264 }
 0x4e8   :  { %277 = vsyncpa [#allocation3], 1 }
 0x4e9   :  { %278 = vsyncpa [#allocation5], 1 }

// kernel: spectral_norm_conv_forward.3
= control target key start
LH: loop header
LB: loop body
LE: loop exit
PB: predicated region body
PF: predicated region fallthrough
CT: control target
= control target key end

     0   :  { %s734_s17 = smov 0   ;;  %s836_s0 = inlined_call_operand.<no memory space> [shape: f32[1,1], index: 0, kind: input, shape index: {}]   ;;  %s837_s1 = inlined_call_operand.vmem [shape: bf16[2,18,72], index: 1, kind: input, shape index: {}]   ;;  %s838_s2 = inlined_call_operand.vmem [shape: bf16[3,72,128], index: 2, kind: input, shape index: {}]   ;;  %s839_s3 = inlined_call_operand.vmem [shape: f32[1,128], index: 3, kind: input, shape index: {}]   ;;  %s840_s4 = inlined_call_operand.vmem [shape: f32[2,16,128], index: 4, kind: output, shape index: {}]  }
   0x1   :  { %9 = sst [smem:[#allocation2]] %s836_s0 }
   0x2 LB: > { %s556_s18 = sadd.s32 4294967295, %s702_s17   ;;  %p560_p0 = scmp.ge.s32.totalorder %s702_s17, 1  ;;  %s702_s17 = sphi %s734_s17, %s15_s17  }
   0x3   : > { %p163_p1 = scmp.lt.s32.totalorder %s702_s17, 3 }
   0x5   : > { %p164_p2 = pnand %p560_p0, %p163_p1 }
   0x6   : > { %p189_p3 = scmp.lt.s32.totalorder (!%p164_p2), %s556_s18, 1  ;;  %s200_s27 = sld [smem:[#allocation2]] (!%p164_p2) }
   0x7   : > { %167 = sbr.rel (%p164_p2) target bundleno = 257 (0x101), region = 36 }
   0xc   : > { %v678_v0 = vld [vmem:[%s838_s2 + $0x44] ss:$0 sps:$4 sm:$0xff]   ;;  %vm276_vm0 = vcmask 1043456   ;;  %v704_v1 = vmov 0.0   ;;  %v679_v2 = vld [vmem:[%s838_s2 + $0x20] ss:$0 sps:$4 sm:$0xff]   ;;  %v488_v45 = vstv %s200_s27 }
   0xd   : > { %625 = vmatprep.subr.bf16.mxu0 %v704_v1  ;;  %639 = vmatprep.subr.bf16.mxu1 %v704_v1  ;;  %v278_v3 = vsel %vm276_vm0, %v678_v0, 0  ;;  %v351_v4 = vsel %vm276_vm0, %v679_v2, 0  ;;  %v680_v5 = vld [vmem:[%s838_s2 + $0x3c] sm:$0xff]   ;;  %vm705_vm1 = vmmov 0   ;;  %v682_v7 = vld [vmem:[%s838_s2 + $0x34] sm:$0xff]   ;;  %s842_s18 = smov (!%p189_p3, %s556_s18), 1 }
   0xe   : > { %626 = vmatpush3.bf16.msra.mxu0 %v278_v3  ;;  %640 = vmatpush3.bf16.msra.mxu1 %v351_v4  ;;  %v681_v6 = vld [vmem:[%s838_s2 + $0x18] sm:$0xff]   ;;  %v683_v8 = vld [vmem:[%s838_s2 + $0x10] sm:$0xff]   ;;  %s667_s30 = smul.u32 12, %s842_s18  ;;  %v685_v10 = vld [vmem:[%s838_s2 + $0x8] sm:$0xff]   ;;  %vm232_vm2 = vsmask.f32 7424 }
   0xf   : > { %627 = vmatprep.subr.bf16.mxu0 %v704_v1  ;;  %641 = vmatprep.subr.bf16.mxu1 %v704_v1  ;;  %v684_v9 = vld [vmem:[%s838_s2 + $0x2c] sm:$0xff]   ;;  %v686_v15 = vld [vmem:[%s838_s2 + $0x24] sm:$0xff]   ;;  %vm272_vm3 = vcmask 588800   ;;  %v692_v27 = vld [vmem:[%s838_s2 + $0x58] sm:$0xff]   ;;  %vm408_vm4 = vcmask 1046528   ;;  %s606_s28 = sshll.u32 %s842_s18, 4 }
  0x10   : > { %635 = vmatprep.mubr.msk.bf16.mxu0 %vm705_vm1, %v704_v1  ;;  %649 = vmatprep.mubr.msk.bf16.mxu1 %vm705_vm1, %v704_v1  ;;  %s784_s11 = scalar_lea.vmem %s837_s1, %s667_s30  ;;  %v687_v19 = vld [vmem:[%s838_s2] sm:$0xff]   ;;  %v690_v20 = vld [vmem:[%s838_s2 + $0x68] ss:$0 sps:$4 sm:$0xff]   ;;  %v693_v29 = vld [vmem:[%s838_s2 + $0x50] sm:$0xff]   ;;  %s198_s7 = scalar_lea.vmem %s840_s4, %s606_s28 }
  0x11   : > { %v202_v11 = vld [vmem:[%s784_s11] sm:$0xf]  ;;  %v203_v12 = vld [vmem:[%s784_s11 + $0x4] sm:$0xf]  ;;  %v443_v24 = vsel %vm276_vm0, %v690_v20, 0  ;;  %v694_v31 = vld [vmem:[%s838_s2 + $0x48] sm:$0xff]  }
  0x12   : > { %628 = vmatpush3.bf16.msra.mxu0 %v680_v5  ;;  %642 = vmatpush3.bf16.msra.mxu1 %v681_v6  ;;  %v573_v13 = vcombine.low %v202_v11, %v203_v12  ;;  %v689_v14 = vld [vmem:[%s784_s11 + $0x8] ss:$0 sps:$4 sm:$0x11]   ;;  %v691_v26 = vld [vmem:[%s838_s2 + $0x60] sm:$0xff]  }
  0x13   : > { %629 = vmatprep.subr.bf16.mxu0 %v704_v1  ;;  %643 = vmatprep.subr.bf16.mxu1 %v704_v1  ;;  %v241_v18 = vshll.u32 %v689_v14, 16  ;;  %v394_v28 = vld [vmem:[%s784_s11] sm:$0xe]  ;;  %v410_v33 = vrot.slane %v689_v14, 1  ;;  %v603_v47 = vld [vmem:[%s839_s3] ss:$0 sm:$0xff] }
  0x14   : > { %v234_v16 = vshrl.u32 %v573_v13, 16  ;;  %v236_v17 = vshll.u32 %v573_v13, 16  ;;  %v596_v30 = vcombine.low %v394_v28, %v203_v12 }
  0x15   : > { %v243_v22 = vrot.slane %v241_v18, 1 }
  0x16   : > { %630 = vmatpush3.bf16.msra.mxu0 %v682_v7  ;;  %644 = vmatpush3.bf16.msra.mxu1 %v683_v8  ;;  %v238_v21 = vrot.slane %v236_v17, 1  ;;  %v409_v32 = vrot.slane %v596_v30, 1 }
  0x17   : > { %631 = vmatprep.subr.bf16.mxu0 %v704_v1  ;;  %645 = vmatprep.subr.bf16.mxu1 %v704_v1 }
  0x18   : > { %v239_v23 = vor.u32 %v238_v21, %v234_v16  ;;  %v411_v34 = vsel %vm408_vm4, %v409_v32, %v410_v33 }
  0x1a   : > { %632 = vmatpush3.bf16.msra.mxu0 %v684_v9  ;;  %646 = vmatpush3.bf16.msra.mxu1 %v685_v10  ;;  %v244_v25 = vsel %vm232_vm2, %v239_v23, %v243_v22 }
  0x1b   : > { %633 = vmatprep.subr.bf16.mxu0 %v704_v1  ;;  %647 = vmatprep.subr.bf16.mxu1 %v704_v1 }
  0x1e   : > { %634 = vmatpush3.bf16.msra.mxu0 %v686_v15  ;;  %648 = vmatpush3.bf16.msra.mxu1 %v687_v19 }
  0x1f   : > { %653 = vmatprep.subr.bf16.mxu0 %v704_v1 }
  0x21   : > { %636 = vmatmul.mubr.msk.bf16.vlgmr.msra.gmra.mxu0 %vm272_vm3, %v244_v25  ;;  %650 = vmatmul.mubr.msk.bf16.vlgmr.msra.gmra.mxu1 %vm272_vm3, %v573_v13 }
  0x22   : > { %654 = vmatpush3.bf16.msra.mxu0 %v443_v24  ;;  %663 = vmatprep.mubr.msk.bf16.mxu0 %vm705_vm1, %v704_v1 }
  0x23   : > { %655 = vmatprep.subr.bf16.mxu0 %v704_v1 }
  0x26   : > { %656 = vmatpush3.bf16.msra.mxu0 %v691_v26 }
  0x27   : > { %657 = vmatprep.subr.bf16.mxu0 %v704_v1 }
  0x2a   : > { %658 = vmatpush3.bf16.msra.mxu0 %v692_v27 }
  0x2b   : > { %659 = vmatprep.subr.bf16.mxu0 %v704_v1 }
  0x2e   : > { %660 = vmatpush3.bf16.msra.mxu0 %v693_v29 }
  0x2f   : > { %661 = vmatprep.subr.bf16.mxu0 %v704_v1 }
  0x32   : > { %662 = vmatpush3.bf16.msra.mxu0 %v694_v31 }
  0x35   : > { %664 = vmatmul.mubr.msk.bf16.vlgmr.msra.gmra.mxu0 %vm272_vm3, %v411_v34 }
  0xe1   : > { %v314_v35 = vpop.f32.mrf.mxu0  ;;  %v387_v36 = vpop.f32.mrf.mxu1 }
  0xe2   : > { %v388_v43 = vadd.f32 %v387_v36, %v314_v35 }
  0xe3   : > { %v637_v37 = vpop.f32.mrf.mxu0  ;;  %v651_v38 = vpop.f32.mrf.mxu1 }
  0xe5   : > { %v317_v39 = vpop.f32.mrf.mxu0  ;;  %v390_v40 = vpop.f32.mrf.mxu1 }
  0xe6   : > { %v391_v49 = vadd.f32 %v390_v40, %v317_v39 }
  0xe7   : > { %v638_v41 = vpop.f32.mrf.mxu0  ;;  %v652_v42 = vpop.f32.mrf.mxu1 }
  0xf5   : > { %v479_v44 = vpop.f32.mrf.mxu0 }
  0xf6   : > { %v486_v46 = vadd.f32 %v479_v44, %v388_v43 }
  0xf7   : > { %v665_v48 = vpop.f32.mrf.mxu0 }
  0xf8   : > { %v489_v50 = vmul.f32 %v488_v45, %v486_v46 }
  0xf9   : > { %v482_v51 = vpop.f32.mrf.mxu0 }
  0xfa   : > { %v497_v52 = vadd.f32 %v603_v47, %v489_v50  ;;  %v487_v53 = vadd.f32 %v482_v51, %v391_v49 }
  0xfb   : > { %v666_v54 = vpop.f32.mrf.mxu0 }
  0xfc   : > { %499 = vst [vmem:[%s198_s7] sm:$0xff] %v497_v52  ;;  %v490_v55 = vmul.f32 %v488_v45, %v487_v53 }
  0xfe   : > { %v498_v56 = vadd.f32 %v603_v47, %v490_v55 }
 0x100   : > { %500 = vst [vmem:[%s198_s7 + $0x8] sm:$0xff] %v498_v56 }
 0x101 PF: > { %s15_s17 = sadd.s32 1, %s702_s17  }
 0x102   : > { %p12_p4 = scmp.ge.s32.totalorder %s15_s17, 4  }
 0x104   :  { %14 = sbr.rel (!%p12_p4) target bundleno = 2 (0x2), region = 68 }

</bundles_post_ra>
